<compile_context>
chip_gen: v7x
topology: tpu7x:2x2x1
jax: 0.10.0
libtpu: 0.0.40
codegen_flags: <defaults>
</compile_context>

<pallas_src>
import numpy as np
import jax
import jax.numpy as jnp
from jax.experimental import pallas as pl
from jax.experimental.pallas import tpu as pltpu


def _pick_time_tile(H, W, pad):
    """Largest Ht dividing H with Ht >= pad, a lane-dense flat tile
    (Ht*W % 128 == 0 unless Ht == H), and a flat tile small enough that the
    double-buffered blocks + scratch stay well inside scoped VMEM."""
    budget = 256 * 1024  # elements per (C, Ht*W) slab
    if H * W <= budget:
        return H
    for Ht in range(H, pad - 1, -1):
        if H % Ht == 0 and Ht * W <= budget and (Ht * W) % 128 == 0:
            return Ht
    return H  # fallback: whole image (correct, just uses more VMEM)


def caus_conv2d(x, weight, bias, *, time_tile_rows=None):
    """Pallas TPU forward of CausConv2d.

    x:      (N, C_in, H, W)
    weight: (C_out, C_in, kH, kW)   (PyTorch Conv2d layout, cross-correlation)
    bias:   (C_out,)
    returns (N, C_out, H, W - kW + 1) in float32
    """
    N, C_in, H, W = (int(s) for s in x.shape)
    C_out, C_in_w, kH, kW = (int(s) for s in weight.shape)
    assert C_in == C_in_w, "weight/in_channels mismatch"
    assert kW <= W, "kernel width must not exceed input width"
    pad = kH - 1
    assert pad >= 1, "CausConv2d requires kernel_size[0] >= 2"

    W_out = W - kW + 1
    if time_tile_rows is None:
        time_tile_rows = _pick_time_tile(H, W, pad)
    Ht = int(time_tile_rows)
    assert H % Ht == 0, "time tile must divide H"
    assert Ht >= pad, "time tile must be at least `pad` rows (carry size)"
    Lt = Ht * W                                   # flat tile length (lanes)
    assert Lt % 128 == 0 or Ht == H, "flat time tile must stay lane-dense"
    T = H // Ht                                   # number of time tiles
    L = H * W

    PW = pad * W                                  # flat causal-history length
    TAIL = W                                      # zero tail (>= kW - 1)
    XPAD = PW + Lt + TAIL                         # padded-timeline scratch len
    K = kH * kW * C_in                            # stacked contraction depth

    # ---- wrapper-side layout plumbing (cheap; no HBM pad pass) -------------
    x_bf = x.astype(jnp.bfloat16).reshape(N, C_in, L)
    # w_stack[co, (kh*kW + kw)*C_in + ci] = weight[co, ci, kh, kw]
    w_stack = jnp.transpose(weight, (0, 2, 3, 1)).reshape(C_out, K)
    w_stack = w_stack.astype(jnp.bfloat16)
    b_col = bias.astype(jnp.float32).reshape(C_out, 1)

    def kernel(x_ref, w_ref, b_ref, o_ref, xpad_ref, xstack_ref):
        # x_ref:      (C_in, Lt)  bf16   current time tile, flattened
        # w_ref:      (C_out, K)  bf16   stacked taps
        # b_ref:      (C_out, 1)  f32
        # o_ref:      (C_out, Lt) f32
        # xpad_ref:   (C_in, PW + Lt + TAIL) bf16  padded timeline (persists)
        # xstack_ref: (K, Lt)     bf16   stacked-K matmul operand
        t = pl.program_id(1)

        @pl.when(t == 0)
        def _():
            # Causal zero history + spare zero tail.  (The tail only ever
            # feeds the trimmed spill columns, but keep it deterministic.)
            xpad_ref[:, :PW] = jnp.zeros((C_in, PW), jnp.bfloat16)
            xpad_ref[:, PW + Lt:PW + Lt + TAIL] = (
                jnp.zeros((C_in, TAIL), jnp.bfloat16))

        # Current tile lands right after the carried history, giving a
        # contiguous padded timeline [history | tile | zero tail] in VMEM.
        xpad_ref[:, PW:PW + Lt] = x_ref[...]

        # Assemble the stacked-K operand: rows [(kh*kW+kw)*C_in, +C_in) hold
        # the tap's shifted window (flat shift kh*W + kw).
        for kh in range(kH):
            for kw in range(kW):
                tap = kh * kW + kw
                off = kh * W + kw
                xstack_ref[tap * C_in:(tap + 1) * C_in, :] = (
                    xpad_ref[:, off:off + Lt])

        # Single MXU matmul over the stacked contraction, f32 accumulate,
        # f32 bias epilogue.
        acc = jnp.dot(w_ref[...], xstack_ref[...],
                      preferred_element_type=jnp.float32)
        o_ref[...] = (acc + b_ref[...]).astype(o_ref.dtype)

        if T > 1:
            # Carry the last `pad` rows of this tile as the next tile's
            # causal history (time axis runs sequentially: "arbitrary").
            xpad_ref[:, :PW] = xpad_ref[:, Lt:Lt + PW]

    flops = 2 * N * C_out * K * L
    bytes_accessed = (2 * N * C_in * L          # bf16 input, one HBM pass
                      + 2 * C_out * K           # bf16 stacked weights
                      + 4 * C_out               # f32 bias
                      + 4 * N * C_out * L)      # f32 output

    out_flat = pl.pallas_call(
        kernel,
        out_shape=jax.ShapeDtypeStruct((N, C_out, L), jnp.float32),
        grid=(N, T),
        in_specs=[
            pl.BlockSpec((None, C_in, Lt), lambda n, t: (n, 0, t)),
            pl.BlockSpec((C_out, K), lambda n, t: (0, 0)),
            pl.BlockSpec((C_out, 1), lambda n, t: (0, 0)),
        ],
        out_specs=pl.BlockSpec((None, C_out, Lt), lambda n, t: (n, 0, t)),
        scratch_shapes=[
            pltpu.VMEM((C_in, XPAD), jnp.bfloat16),
            pltpu.VMEM((K, Lt), jnp.bfloat16),
        ],
        compiler_params=pltpu.CompilerParams(
            dimension_semantics=("parallel", "arbitrary"),
            vmem_limit_bytes=32 * 1024 * 1024),
        cost_estimate=pl.CostEstimate(
            flops=flops, transcendentals=0, bytes_accessed=bytes_accessed),
    )(x_bf, w_stack, b_col)

    # Each flat row of width W holds W_out valid columns followed by (kW - 1)
    # columns that spilled into the next time step; trim them.  In a real
    # model XLA fuses this slice into the consumer (no extra HBM pass).
    return out_flat.reshape(N, C_out, H, W)[:, :, :, :W_out]


def ref_caus_conv2d(x, weight, bias):
    """NumPy float64 reference mirroring the PyTorch forward exactly."""
    x = np.asarray(x, np.float64)
    w = np.asarray(weight, np.float64)
    b = np.asarray(bias, np.float64)
    N, C_in, H, W = x.shape
    C_out, _, kH, kW = w.shape
    pad = kH - 1
    W_out = W - kW + 1
    # Conv2d pads H by `pad` on both sides; the [:-pad] slice means only the
    # top padding is ever visible in the kept rows.
    xp = np.pad(x, ((0, 0), (0, 0), (pad, 0), (0, 0)))
    out = np.zeros((N, C_out, H, W_out))
    for kh in range(kH):
        for kw in range(kW):
            out += np.einsum('oi,nihw->nohw', w[:, :, kh, kw],
                             xp[:, :, kh:kh + H, kw:kw + W_out])
    out += b[None, :, None, None]
    return out


if __name__ == "__main__":
    key = jax.random.PRNGKey(0)
    kx, kw_, kb = jax.random.split(key, 3)

    N, C_in, C_out = 2, 4, 8
    H, W = 16, 16          # (time frames, features) spectrogram / GCC slab
    kH, kW = 3, 3          # pad = kH - 1 = 2

    x = jax.random.normal(kx, (N, C_in, H, W), dtype=jnp.float32)
    weight = jax.random.normal(kw_, (C_out, C_in, kH, kW), dtype=jnp.float32) * 0.1
    bias = jax.random.normal(kb, (C_out,), dtype=jnp.float32) * 0.1

    # Reference on bf16-quantized inputs (the kernel intentionally casts x and
    # weight to bf16; accumulation stays f32, so this comparison is tight).
    x_q = np.asarray(x.astype(jnp.bfloat16).astype(jnp.float32))
    w_q = np.asarray(weight.astype(jnp.bfloat16).astype(jnp.float32))
    y_ref = ref_caus_conv2d(x_q, w_q, np.asarray(bias))

    # 1) whole-image time tile (single time step per image; amortizes the
    #    per-grid-step overhead at small shapes).
    y1 = jax.block_until_ready(caus_conv2d(x, weight, bias))
    assert y1.shape == (N, C_out, H, W - kW + 1)
    np.testing.assert_allclose(np.asarray(y1), y_ref, rtol=2e-3, atol=2e-3)

    # 2) time-tiled path (Ht=8 -> 2 tiles/image), exercising the causal carry
    #    between tiles that makes large-H spectrograms fit VMEM.
    y2 = jax.block_until_ready(caus_conv2d(x, weight, bias, time_tile_rows=8))
    np.testing.assert_allclose(np.asarray(y2), y_ref, rtol=2e-3, atol=2e-3)

    print("KERNEL_OK")
</pallas_src>

<mosaic_0001>
module attributes {stable_mosaic.version = 11 : i64} {
  func.func @kernel(%arg0: i32, %arg1: i32, %arg2: memref<1x4x256xbf16, #tpu.memory_space<vmem>>, %arg3: memref<8x36xbf16, #tpu.memory_space<vmem>>, %arg4: memref<8x1xf32, #tpu.memory_space<vmem>>, %arg5: memref<1x8x256xf32, #tpu.memory_space<vmem>>, %arg6: memref<4x304xbf16, #tpu.memory_space<vmem>>, %arg7: memref<36x256xbf16, #tpu.memory_space<vmem>>) attributes {dimension_semantics = [#tpu.dimension_semantics<parallel>, #tpu.dimension_semantics<arbitrary>], iteration_bounds = array<i64: 2, 1>, scalar_prefetch = 0 : i64, scratch_operands = 2 : i64, tpu.core_type = #tpu.core_type<tc>, window_params = [{transform_indices = @transform_0, window_bounds = array<i64: 1, 4, 256>}, {pipeline_mode = #tpu.pipeline_mode<synchronous>, transform_indices = @transform_1, window_bounds = array<i64: 8, 36>}, {pipeline_mode = #tpu.pipeline_mode<synchronous>, transform_indices = @transform_2, window_bounds = array<i64: 8, 1>}, {transform_indices = @transform_3, window_bounds = array<i64: 1, 8, 256>}]} {
    %c0_i32 = arith.constant 0 : i32
    %0 = arith.cmpi eq, %arg1, %c0_i32 : i32
    %1 = arith.extui %0 : i1 to i32
    %c0_i32_0 = arith.constant 0 : i32
    %2 = arith.cmpi ne, %1, %c0_i32_0 : i32
    scf.if %2 {
      %cst_36 = arith.constant 0.000000e+00 : bf16
      %33 = vector.broadcast %cst_36 : bf16 to vector<4x32xbf16>
      %c0_37 = arith.constant 0 : index
      %c0_38 = arith.constant 0 : index
      %34 = vector.load %arg6[%c0_37, %c0_38] : memref<4x304xbf16, #tpu.memory_space<vmem>>, vector<4x32xbf16>
      tpu.vector_store %arg6[%c0_37, %c0_38], %33 {strides = array<i32>} : memref<4x304xbf16, #tpu.memory_space<vmem>>, vector<4x32xbf16>,
      %cst_39 = arith.constant 0.000000e+00 : bf16
      %35 = vector.broadcast %cst_39 : bf16 to vector<4x16xbf16>
      %c0_40 = arith.constant 0 : index
      %c288 = arith.constant 288 : index
      %36 = vector.load %arg6[%c0_40, %c288] : memref<4x304xbf16, #tpu.memory_space<vmem>>, vector<4x16xbf16>
      tpu.vector_store %arg6[%c0_40, %c288], %35 {strides = array<i32>} : memref<4x304xbf16, #tpu.memory_space<vmem>>, vector<4x16xbf16>,
    } else {
    }
    %c0 = arith.constant 0 : index
    %c0_1 = arith.constant 0 : index
    %c0_2 = arith.constant 0 : index
    %3 = vector.load %arg2[%c0, %c0_1, %c0_2] : memref<1x4x256xbf16, #tpu.memory_space<vmem>>, vector<1x4x256xbf16>
    %4 = vector.shape_cast %3 : vector<1x4x256xbf16> to vector<4x256xbf16>
    %c0_3 = arith.constant 0 : index
    %c32 = arith.constant 32 : index
    %5 = vector.load %arg6[%c0_3, %c32] : memref<4x304xbf16, #tpu.memory_space<vmem>>, vector<4x256xbf16>
    tpu.vector_store %arg6[%c0_3, %c32], %4 {strides = array<i32>} : memref<4x304xbf16, #tpu.memory_space<vmem>>, vector<4x256xbf16>,
    %c0_4 = arith.constant 0 : index
    %c0_5 = arith.constant 0 : index
    %6 = vector.load %arg6[%c0_4, %c0_5] : memref<4x304xbf16, #tpu.memory_space<vmem>>, vector<4x256xbf16>
    %c0_6 = arith.constant 0 : index
    %c0_7 = arith.constant 0 : index
    %7 = vector.load %arg7[%c0_6, %c0_7] : memref<36x256xbf16, #tpu.memory_space<vmem>>, vector<4x256xbf16>
    tpu.vector_store %arg7[%c0_6, %c0_7], %6 {strides = array<i32>} : memref<36x256xbf16, #tpu.memory_space<vmem>>, vector<4x256xbf16>,
    %c0_8 = arith.constant 0 : index
    %c1 = arith.constant 1 : index
    %8 = vector.load %arg6[%c0_8, %c1] : memref<4x304xbf16, #tpu.memory_space<vmem>>, vector<4x256xbf16>
    %c4 = arith.constant 4 : index
    %c0_9 = arith.constant 0 : index
    %9 = vector.load %arg7[%c4, %c0_9] : memref<36x256xbf16, #tpu.memory_space<vmem>>, vector<4x256xbf16>
    tpu.vector_store %arg7[%c4, %c0_9], %8 {strides = array<i32>} : memref<36x256xbf16, #tpu.memory_space<vmem>>, vector<4x256xbf16>,
    %c0_10 = arith.constant 0 : index
    %c2 = arith.constant 2 : index
    %10 = vector.load %arg6[%c0_10, %c2] : memref<4x304xbf16, #tpu.memory_space<vmem>>, vector<4x256xbf16>
    %c8 = arith.constant 8 : index
    %c0_11 = arith.constant 0 : index
    %11 = vector.load %arg7[%c8, %c0_11] : memref<36x256xbf16, #tpu.memory_space<vmem>>, vector<4x256xbf16>
    tpu.vector_store %arg7[%c8, %c0_11], %10 {strides = array<i32>} : memref<36x256xbf16, #tpu.memory_space<vmem>>, vector<4x256xbf16>,
    %c0_12 = arith.constant 0 : index
    %c16 = arith.constant 16 : index
    %12 = vector.load %arg6[%c0_12, %c16] : memref<4x304xbf16, #tpu.memory_space<vmem>>, vector<4x256xbf16>
    %c12 = arith.constant 12 : index
    %c0_13 = arith.constant 0 : index
    %13 = vector.load %arg7[%c12, %c0_13] : memref<36x256xbf16, #tpu.memory_space<vmem>>, vector<4x256xbf16>
    tpu.vector_store %arg7[%c12, %c0_13], %12 {strides = array<i32>} : memref<36x256xbf16, #tpu.memory_space<vmem>>, vector<4x256xbf16>,
    %c0_14 = arith.constant 0 : index
    %c17 = arith.constant 17 : index
    %14 = vector.load %arg6[%c0_14, %c17] : memref<4x304xbf16, #tpu.memory_space<vmem>>, vector<4x256xbf16>
    %c16_15 = arith.constant 16 : index
    %c0_16 = arith.constant 0 : index
    %15 = vector.load %arg7[%c16_15, %c0_16] : memref<36x256xbf16, #tpu.memory_space<vmem>>, vector<4x256xbf16>
    tpu.vector_store %arg7[%c16_15, %c0_16], %14 {strides = array<i32>} : memref<36x256xbf16, #tpu.memory_space<vmem>>, vector<4x256xbf16>,
    %c0_17 = arith.constant 0 : index
    %c18 = arith.constant 18 : index
    %16 = vector.load %arg6[%c0_17, %c18] : memref<4x304xbf16, #tpu.memory_space<vmem>>, vector<4x256xbf16>
    %c20 = arith.constant 20 : index
    %c0_18 = arith.constant 0 : index
    %17 = vector.load %arg7[%c20, %c0_18] : memref<36x256xbf16, #tpu.memory_space<vmem>>, vector<4x256xbf16>
    tpu.vector_store %arg7[%c20, %c0_18], %16 {strides = array<i32>} : memref<36x256xbf16, #tpu.memory_space<vmem>>, vector<4x256xbf16>,
    %c0_19 = arith.constant 0 : index
    %c32_20 = arith.constant 32 : index
    %18 = vector.load %arg6[%c0_19, %c32_20] : memref<4x304xbf16, #tpu.memory_space<vmem>>, vector<4x256xbf16>
    %c24 = arith.constant 24 : index
    %c0_21 = arith.constant 0 : index
    %19 = vector.load %arg7[%c24, %c0_21] : memref<36x256xbf16, #tpu.memory_space<vmem>>, vector<4x256xbf16>
    tpu.vector_store %arg7[%c24, %c0_21], %18 {strides = array<i32>} : memref<36x256xbf16, #tpu.memory_space<vmem>>, vector<4x256xbf16>,
    %c0_22 = arith.constant 0 : index
    %c33 = arith.constant 33 : index
    %20 = vector.load %arg6[%c0_22, %c33] : memref<4x304xbf16, #tpu.memory_space<vmem>>, vector<4x256xbf16>
    %c28 = arith.constant 28 : index
    %c0_23 = arith.constant 0 : index
    %21 = vector.load %arg7[%c28, %c0_23] : memref<36x256xbf16, #tpu.memory_space<vmem>>, vector<4x256xbf16>
    tpu.vector_store %arg7[%c28, %c0_23], %20 {strides = array<i32>} : memref<36x256xbf16, #tpu.memory_space<vmem>>, vector<4x256xbf16>,
    %c0_24 = arith.constant 0 : index
    %c34 = arith.constant 34 : index
    %22 = vector.load %arg6[%c0_24, %c34] : memref<4x304xbf16, #tpu.memory_space<vmem>>, vector<4x256xbf16>
    %c32_25 = arith.constant 32 : index
    %c0_26 = arith.constant 0 : index
    %23 = vector.load %arg7[%c32_25, %c0_26] : memref<36x256xbf16, #tpu.memory_space<vmem>>, vector<4x256xbf16>
    tpu.vector_store %arg7[%c32_25, %c0_26], %22 {strides = array<i32>} : memref<36x256xbf16, #tpu.memory_space<vmem>>, vector<4x256xbf16>,
    %c0_27 = arith.constant 0 : index
    %c0_28 = arith.constant 0 : index
    %24 = vector.load %arg3[%c0_27, %c0_28] : memref<8x36xbf16, #tpu.memory_space<vmem>>, vector<8x36xbf16>
    %c0_29 = arith.constant 0 : index
    %c0_30 = arith.constant 0 : index
    %25 = vector.load %arg7[%c0_29, %c0_30] : memref<36x256xbf16, #tpu.memory_space<vmem>>, vector<36x256xbf16>
    %cst = arith.constant dense<0.000000e+00> : vector<8x256xf32>
    %26 = tpu.matmul %24, %25, %cst {dimension_numbers = #tpu.dot_dimension_numbers<[1], [0], [0], [1], [0, 0, 1, 1], [], []>} : vector<8x36xbf16>, vector<36x256xbf16>, vector<8x256xf32> -> vector<8x256xf32>
    %c0_31 = arith.constant 0 : index
    %c0_32 = arith.constant 0 : index
    %27 = vector.load %arg4[%c0_31, %c0_32] : memref<8x1xf32, #tpu.memory_space<vmem>>, vector<8x1xf32>
    %28 = vector.broadcast %27 : vector<8x1xf32> to vector<8x256xf32>
    %29 = arith.addf %26, %28 : vector<8x256xf32>
    %c0_33 = arith.constant 0 : index
    %c0_34 = arith.constant 0 : index
    %c0_35 = arith.constant 0 : index
    %30 = vector.load %arg5[%c0_33, %c0_34, %c0_35] : memref<1x8x256xf32, #tpu.memory_space<vmem>>, vector<1x8x256xf32>
    %31 = vector.shape_cast %30 : vector<1x8x256xf32> to vector<8x256xf32>
    %32 = vector.shape_cast %29 : vector<8x256xf32> to vector<1x8x256xf32>
    tpu.vector_store %arg5[%c0_33, %c0_34, %c0_35], %32 {strides = array<i32>} : memref<1x8x256xf32, #tpu.memory_space<vmem>>, vector<1x8x256xf32>,
    return
  }
  func.func @transform_0(%arg0: i32, %arg1: i32) -> (i32, i32, i32) {
    %c0_i32 = arith.constant 0 : i32
    %c0_i32_0 = arith.constant 0 : i32
    return %arg0, %c0_i32, %arg1 : i32, i32, i32
  }
  func.func @transform_1(%arg0: i32, %arg1: i32) -> (i32, i32) {
    %c0_i32 = arith.constant 0 : i32
    %c0_i32_0 = arith.constant 0 : i32
    %c0_i32_1 = arith.constant 0 : i32
    return %c0_i32, %c0_i32_0 : i32, i32
  }
  func.func @transform_2(%arg0: i32, %arg1: i32) -> (i32, i32) {
    %c0_i32 = arith.constant 0 : i32
    %c0_i32_0 = arith.constant 0 : i32
    %c0_i32_1 = arith.constant 0 : i32
    return %c0_i32, %c0_i32_0 : i32, i32
  }
  func.func @transform_3(%arg0: i32, %arg1: i32) -> (i32, i32, i32) {
    %c0_i32 = arith.constant 0 : i32
    %c0_i32_0 = arith.constant 0 : i32
    return %arg0, %c0_i32, %arg1 : i32, i32, i32
  }
}

</mosaic_0001>

<bundles_post_ra>
// kernel: tpu_custom_call.1
= control target key start
LH: loop header
LB: loop body
LE: loop exit
PB: predicated region body
PF: predicated region fallthrough
CT: control target
= control target key end

     0   :  { %8 = vsyncpa [#allocation5], 0  ;;  %s991_s0 = inlined_call_operand.vmem [shape: bf16[2,4,256], index: 0, kind: input, shape index: {}]   ;;  %s992_s1 = inlined_call_operand.vmem [shape: bf16[8,36], index: 1, kind: input, shape index: {}]   ;;  %s993_s2 = inlined_call_operand.vmem [shape: f32[8,1], index: 2, kind: input, shape index: {}]   ;;  %s994_s3 = inlined_call_operand.hbm [shape: f32[2,8,256], index: 3, kind: output, shape index: {}]  }
   0x1   :  { %10 = vsyncpa [#allocation5 + $0x1], 0  ;;  %s863_s12 = smov 0   ;;  %s865_s13 = smov 0  }
   0x2   :  { %s867_s14 = smov 0   ;;  %s869_s15 = smov 0  }
   0x3   :  { %s871_s16 = smov 0   ;;  %s873_s17 = smov 0  }
   0x4 LB: > { %s643_s18 = sadd.s32 4294967295, %s829_s17   ;;  %s644_s19 = sadd.s32 4294967294, %s829_s17   ;;  %s829_s17 = sphi %s873_s17, %s16_s17   ;;  %s825_s16 = sphi %s871_s16, %s1001_s16   ;;  %s821_s15 = sphi %s869_s15, %s1000_s15   ;;  %s817_s14 = sphi %s867_s14, %s999_s14   ;;  %s813_s13 = sphi %s865_s13, %s998_s13   ;;  %s809_s12 = sphi %s863_s12, %s997_s12  }
   0x5   : > { %s28_s20 = sadd.s32 1, %s825_s16  ;;  %s107_s21 = sadd.s32 1, %s817_s14 }
   0x6   : > { %p30_p0 = scmp.ge.s32.totalorder %s28_s20, 2  ;;  %p117_p1 = scmp.ne.s32.totalorder %s817_s14, %s813_s13 }
   0x7   : > { %p118_p2 = scmp.eq.s32.totalorder %s643_s18, 1  ;;  %p123_p3 = scmp.ne.s32.totalorder %s813_s13, %s809_s12 }
   0x8   : > { %s1003_s20 = smov (%p30_p0, %s28_s20), 0  ;;  %p124_p5 = scmp.eq.s32.totalorder %s644_s19, 1 }
   0x9   : > { %p903_p4 = por %p118_p2, %p117_p1  ;;  %s102_s23 = ssub.s32 %s825_s16, %s1003_s20 }
   0xa   : > { %p647_p6 = scmp.ge.s32.totalorder %s829_s17, 1  ;;  %p105_p7 = scmp.eq.s32.totalorder %s102_s23, 0 }
   0xb   : > { %p910_p8 = por %p124_p5, %p123_p3  ;;  %p161_p9 = scmp.lt.s32.totalorder %s829_s17, 3 }
   0xc   : > { %s916_s25 = scalar_select %p105_p7, %s817_s14, %s107_s21  }
   0xd   : > { %p162_p10 = pnand %p647_p6, %p161_p9 }
   0xe   : > { %p190_p11 = scmp.lt.s32.totalorder (!%p162_p10), %s821_s15, 1  ;;  %vm205_vm0 = vcmask (!%p162_p10), 254976   ;;  %vm207_vm1 = vcmask (!%p162_p10), 386304   ;;  %v831_v0 = vmov (!%p162_p10), 0   ;;  %s832_s4 = smov (!%p162_p10), 32   ;;  %vm217_vm2 = vcmask (!%p162_p10), 1041664  }
   0xf   : > { %165 = sbr.rel (%p162_p10) target bundleno = 546 (0x222), region = 32  ;;  %206 = vst.msk [vmem:[#allocation2] sm:$0x3] (!%p162_p10), %vm205_vm0, %v831_v0  ;;  %539 = vmatprep.mubr.bf16.mxu0 (!%p162_p10), %v831_v0  ;;  %733 = vset.pattern.permute.xlu1 (!%p162_p10), %v831_v0  ;;  %vm218_vm3 = vcmask (!%p162_p10), 1043458   ;;  %vm220_vm5 = vcmask (!%p162_p10), 259076   ;;  %vm214_vm6 = vcmask (!%p162_p10), 261120   ;;  %v240_v5 = vlaneseq (!%p162_p10) }
  0x10   : > { %208 = vst.msk [vmem:[#allocation2 + $0x4] sm:$0x3] (!%p162_p10), %vm207_vm1, %v831_v0  ;;  %734 = vset.pattern.permute.xlu0 (!%p162_p10), %v831_v0  ;;  %vm219_vm4 = vmor (!%p162_p10), %vm218_vm3, %vm217_vm2  ;;  %v833_v3 = vmov (!%p162_p10), 1983009808   ;;  %s834_s5 = smov (!%p162_p10), 112   ;;  %s835_s6 = smov (!%p162_p10), 127  }
  0x11   : > { %v238_v4 = vunpack.c.l.s4 (!%p162_p10), %v833_v3  ;;  %vm221_vm7 = vmor (!%p162_p10), %vm220_vm5, %vm219_vm4  ;;  %v241_v9 = vshrl.u32 (!%p162_p10), %v240_v5, 7  ;;  %s836_s7 = smov (!%p162_p10), 110   ;;  %s837_s8 = smov (!%p162_p10), 126   ;;  %v465_v44 = vld [vmem:[%s993_s2] sm:$0xff] (!%p162_p10)  ;;  %vm257_vm8 = vcmask (!%p162_p10), 1043456   ;;  %vm259_vm9 = vcmask (!%p162_p10), 1039360  }
  0x12   : > { %s838_s9 = smov (!%p162_p10), 95   ;;  %s839_s10 = smov (!%p162_p10), 111   ;;  %vm315_vm10 = vcmask (!%p162_p10), 916480   ;;  %vm287_vm11 = vcmask (!%p162_p10), 1031168   ;;  %vm371_vm12 = vcmask (!%p162_p10), 900096   ;;  %vm343_vm13 = vcmask (!%p162_p10), 908288  }
  0x13   : > { %v239_v8 = vunpack.c.0.s8 (!%p162_p10), %v238_v4  ;;  %s840_s11 = smov (!%p162_p10), 96   ;;  %s841_s18 = smov (!%p162_p10), 94   ;;  %vm427_vm14 = vcmask (!%p162_p10), 777216   ;;  %vm399_vm15 = vcmask (!%p162_p10), 785408   ;;  %vm455_vm0 = vcmask (!%p162_p10), 769024  }
  0x14   : > { %vm500_vm1 = vcmask (!%p162_p10), 1041408   ;;  %vm496_vm2 = vcmask (!%p162_p10), 293888   ;;  %s666_s29 = sshll.u32 (!%p162_p10), %s821_s15, 8 }
  0x15   : > { %v242_v10 = vsub.s32 (!%p162_p10), %v239_v8, %v241_v9 }
  0x16   : > { %s191_s26 = scalar_select %p190_p11, %s821_s15, 1 }
  0x18   : > { %s665_s27 = sshll.u32 %s191_s26, 2 }
  0x19   : > { %s197_s30 = scalar_lea.vmem %s991_s0, %s665_s27  ;;  %s186_s27 = sand.u32 1, %s813_s13  }
  0x1a   : > { %v209_v1 = vld [vmem:[%s197_s30] sm:$0xf]  ;;  %s648_s28 = sshll.u32 %s186_s27, 4  ;;  %s551_s15 = scalar_lea.sflag [#allocation5], %s186_s27 }
  0x1b   : > { %211 = vrot.lane.b32.xlu0 %v209_v1, %s832_s4  ;;  %s188_s30 = scalar_lea.vmem [#allocation4], %s648_s28 }
  0x1c   : > { %s567_s4 = sshll.u32 %s188_s30, 4  ;;  %s946_s4 = int_to_ptr.vmem [resolvable:$true] %s567_s4 }
  0x8d   : > { %v212_v2 = vpop.permute.xlu0 %211 }
  0x8e   : > { %v213_v6 = vrot.slane %v212_v2, 6 }
  0x90   : > { %v215_v7 = vsel %vm214_vm6, %v213_v6, %v212_v2 }
  0x91   : > { %222 = vst.msk [vmem:[#allocation2] sm:$0x3f] %vm221_vm7, %v215_v7 }
  0x98   : > { %v291_v11 = vld [vmem:[#allocation2] sm:$0x3f] }
  0x99   : > { %v234_v12 = vld [vmem:[#allocation2] sm:$0x3f]  ;;  %v307_v13 = vrot.slane %v291_v11, %v242_v10  ;;  %v293_v28 = vcombine.low %v291_v11, %v291_v11 }
  0x9a   : > { %v250_v14 = vrot.slane %v234_v12, %v242_v10  ;;  %v347_v15 = vld [vmem:[#allocation2] sm:$0x3f]  ;;  %v236_v22 = vcombine.low %v234_v12, %v234_v12 }
  0x9b   : > { %v263_v16 = vld [vmem:[#allocation2] sm:$0x3f]  ;;  %310 = vrot.lane.b32.xlu0 %v307_v13, %s834_s5  ;;  %v363_v18 = vrot.slane %v347_v15, %v242_v10  ;;  %v300_v30 = vrot.slane %v293_v28, %v242_v10  ;;  %v349_v32 = vcombine.low %v347_v15, %v347_v15 }
  0x9c   : > { %253 = vrot.lane.b32.xlu1 %v250_v14, %s835_s6  ;;  %v651_v17 = vld.sshfl [vmem:[#allocation2] sm:$0x33 pattern:$0x76325410]  ;;  %v272_v19 = vrot.slane %v263_v16, %v242_v10  ;;  %v243_v27 = vrot.slane %v236_v22, %v242_v10  ;;  %v265_v29 = vcombine.high %v263_v16, %v263_v16 }
  0x9d   : > { %233 = vst [vmem:[#allocation3] sm:$0x33] %v651_v17  ;;  %v403_v20 = vld [vmem:[#allocation2] sm:$0x3f]  ;;  %v356_v34 = vrot.slane %v349_v32, %v242_v10 }
  0x9e   : > { %v319_v21 = vld [vmem:[#allocation2] sm:$0x3f]  ;;  %v419_v23 = vrot.slane %v403_v20, %v242_v10  ;;  %v279_v31 = vrot.slane %v265_v29, %v242_v10  ;;  %v405_v36 = vcombine.low %v403_v20, %v403_v20 }
  0x9f   : > { %366 = vrot.lane.b32.xlu0 %v363_v18, %s836_s7  ;;  %v328_v24 = vrot.slane %v319_v21, %v242_v10  ;;  %v375_v25 = vld [vmem:[#allocation2] sm:$0x3f]  ;;  %v321_v33 = vcombine.high %v319_v21, %v319_v21 }
  0xa0   : > { %280 = vrot.lane.b32.xlu1 %v272_v19, %s837_s8  ;;  %v384_v26 = vrot.slane %v375_v25, %v242_v10  ;;  %v377_v37 = vcombine.high %v375_v25, %v375_v25  ;;  %v431_v38 = vld [vmem:[#allocation2] sm:$0x3f]  ;;  %v412_v39 = vrot.slane %v405_v36, %v242_v10 }
  0xa1   : > { %v335_v35 = vrot.slane %v321_v33, %v242_v10  ;;  %v433_v41 = vcombine.high %v431_v38, %v431_v38  ;;  %v440_v42 = vrot.slane %v431_v38, %v242_v10 }
  0xa2   : > { %v391_v40 = vrot.slane %v377_v37, %v242_v10  ;;  %v459_v37 = vld [vmem:[%s992_s1] sm:$0xf] }
  0xa3   : > { %422 = vrot.lane.b32.xlu0 %v419_v23, %s838_s9  ;;  %v447_v43 = vrot.slane %v433_v41, %v242_v10 }
  0xa4   : > { %336 = vrot.lane.b32.xlu1 %v328_v24, %s839_s10 }
  0xa7   : > { %251 = vrot.lane.b32.xlu0 %v243_v27, %s835_s6 }
  0xa8   : > { %392 = vrot.lane.b32.xlu1 %v384_v26, %s840_s11 }
  0xab   : > { %282 = vrot.lane.b32.xlu0 %v279_v31, %s837_s8  ;;  %s751_s8 = scalar_lea.vmem %s946_s4, 256 }
  0xac   : > { %308 = vrot.lane.b32.xlu1 %v300_v30, %s834_s5  ;;  %p752_p12 = scmp.ne.s32.totalorder %s946_s4, %s751_s8 }
  0xae   : > { %p753_p13 = pnand %p752_p12, %p903_p4 }
  0xaf   : > { %338 = vrot.lane.b32.xlu0 %v335_v35, %s839_s10 }
  0xb0   : > { %364 = vrot.lane.b32.xlu1 %v356_v34, %s836_s7  ;;  %s944_s7 = scalar_lea.hbm %s994_s3, %s666_s29  ;;  %p754_p0 = pneg %p753_p13 }
  0xb3   : > { %394 = vrot.lane.b32.xlu0 %v391_v40, %s840_s11 }
  0xb4   : > { %420 = vrot.lane.b32.xlu1 %v412_v39, %s838_s9  ;;  %s842_s9 = smov [#allocation4]  }
  0xb5   : > { %s755_s10 = sshll.u32 %s842_s9, 4  ;;  %s756_s10 = int_to_ptr.vmem [resolvable:$false] %s755_s10 }
  0xb6   : > { %s757_s11 = scalar_lea.vmem %s756_s10, 512  ;;  %p758_p1 = scmp.lt.s32.totalorder %s946_s4, %s756_s10 }
  0xb7   : > { %450 = vrot.lane.b32.xlu0 %v447_v43, %s841_s18  ;;  %p759_p2 = scmp.lt.s32.totalorder %s757_s11, %s751_s8 }
  0xb8   : > { %448 = vrot.lane.b32.xlu1 %v440_v42, %s841_s18 }
  0xb9   : > { %p760_p3 = por %p759_p2, %p758_p1 }
  0xbb   : > { %p761_p5 = pnand %p760_p3, %p754_p0 }
  0xbc   : > { %468 = vperm.xlu1 %733, %v465_v44  }
 0x10d   : > { %v311_v45 = vpop.permute.xlu0 %310 }
 0x10e   : > { %v254_v46 = vpop.permute.xlu1 %253  ;;  %v313_v59 = vrot.slane %v311_v45, 4 }
 0x10f   : > { %v256_v53 = vrot.slane %v254_v46, 4 }
 0x111   : > { %v367_v47 = vpop.permute.xlu0 %366 }
 0x112   : > { %v281_v48 = vpop.permute.xlu1 %280  ;;  %v369_v5 = vrot.slane %v367_v47, 4 }
 0x113   : > { %v284_v60 = vrot.slane %v281_v48, 4 }
 0x115   : > { %v423_v49 = vpop.permute.xlu0 %422 }
 0x116   : > { %v337_v50 = vpop.permute.xlu1 %336  ;;  %v425_v15 = vrot.slane %v423_v49, 4 }
 0x117   : > { %v340_v6 = vrot.slane %v337_v50, 4 }
 0x119   : > { %v252_v52 = vpop.permute.xlu0 %251 }
 0x11a   : > { %v393_v51 = vpop.permute.xlu1 %392  ;;  %v255_v54 = vrot.slane %v252_v52, 4 }
 0x11b   : > { %v396_v16 = vrot.slane %v393_v51, 4 }
 0x11c   : > { %v258_v55 = vsel %vm257_vm8, %v255_v54, %v256_v53 }
 0x11d   : > { %v260_v56 = vsel %vm259_vm9, %v252_v52, %v258_v55  ;;  %v283_v58 = vpop.permute.xlu0 %282 }
 0x11e   : > { %v309_v57 = vpop.permute.xlu1 %308  ;;  %262 = vst [vmem:[#allocation3] sm:$0xcc] %v260_v56  ;;  %v285_v62 = vrot.slane %v283_v58, 4 }
 0x11f   : > { %v312_v61 = vrot.slane %v309_v57, 4 }
 0x120   : > { %v286_v0 = vsel %vm257_vm8, %v284_v60, %v285_v62 }
 0x121   : > { %v314_v63 = vsel %vm257_vm8, %v312_v61, %v313_v59  ;;  %v288_v2 = vsel %vm287_vm11, %v281_v48, %v286_v0  ;;  %v339_v4 = vpop.permute.xlu0 %338 }
 0x122   : > { %v316_v1 = vsel %vm315_vm10, %v309_v57, %v314_v63  ;;  %v365_v3 = vpop.permute.xlu1 %364  ;;  %290 = vst [vmem:[#allocation3 + $0x8] sm:$0x33] %v288_v2  ;;  %v341_v8 = vrot.slane %v339_v4, 4 }
 0x123   : > { %318 = vst [vmem:[#allocation3 + $0x8] sm:$0xcc] %v316_v1  ;;  %v368_v7 = vrot.slane %v365_v3, 4 }
 0x124   : > { %v342_v10 = vsel %vm257_vm8, %v340_v6, %v341_v8 }
 0x125   : > { %v370_v9 = vsel %vm257_vm8, %v368_v7, %v369_v5  ;;  %v344_v12 = vsel %vm343_vm13, %v337_v50, %v342_v10  ;;  %v395_v14 = vpop.permute.xlu0 %394 }
 0x126   : > { %v372_v11 = vsel %vm371_vm12, %v365_v3, %v370_v9  ;;  %v421_v13 = vpop.permute.xlu1 %420  ;;  %346 = vst [vmem:[#allocation3 + $0x10] sm:$0x33] %v344_v12  ;;  %v397_v18 = vrot.slane %v395_v14, 4 }
 0x127   : > { %374 = vst [vmem:[#allocation3 + $0x10] sm:$0xcc] %v372_v11  ;;  %v424_v17 = vrot.slane %v421_v13, 4 }
 0x128   : > { %v398_v20 = vsel %vm257_vm8, %v396_v16, %v397_v18 }
 0x129   : > { %v426_v19 = vsel %vm257_vm8, %v424_v17, %v425_v15  ;;  %v400_v22 = vsel %vm399_vm15, %v393_v51, %v398_v20  ;;  %v451_v24 = vpop.permute.xlu0 %450 }
 0x12a   : > { %v428_v21 = vsel %vm427_vm14, %v421_v13, %v426_v19  ;;  %v449_v23 = vpop.permute.xlu1 %448  ;;  %v743_v25 = vld [vmem:[#allocation3 + $0x4] ss:$8 sps:$4 sm:$0xff]   ;;  %v745_v26 = vld [vmem:[#allocation3] ss:$8 sps:$4 sm:$0xff]   ;;  %402 = vst [vmem:[#allocation3 + $0x18] sm:$0x33] %v400_v22 }
 0x12b   : > { %430 = vst [vmem:[#allocation3 + $0x18] sm:$0xcc] %v428_v21  ;;  %v452_v27 = vrot.slane %v449_v23, 4  ;;  %v453_v28 = vrot.slane %v451_v24, 4  ;;  %507 = vmatprep.subr.bf16.mxu0 %v743_v25 }
 0x12c   : > { %508 = vmatpush1.bf16.msra.mxu0 %v745_v26 }
 0x12d   : > { %v454_v29 = vsel %vm257_vm8, %v452_v27, %v453_v28 }
 0x12e   : > { %v456_v30 = vsel %vm455_vm0, %v449_v23, %v454_v29 }
 0x12f   : > { %458 = vst [vmem:[#allocation3 + $0x20] sm:$0x33] %v456_v30 }
 0x132   : > { %v746_v31 = vld [vmem:[#allocation3 + $0x14] ss:$8 sps:$4 sm:$0xff]   ;;  %v748_v32 = vld [vmem:[#allocation3 + $0x10] ss:$8 sps:$4 sm:$0xff]  }
 0x133   : > { %509 = vmatprep.subr.bf16.mxu0 %v746_v31 }
 0x134   : > { %510 = vmatpush1.bf16.msra.mxu0 %v748_v32 }
 0x136   : > { %v464_v33 = vld [vmem:[#allocation3 + $0x20] sm:$0x33] }
 0x137   : > { %v657_v34 = vcombine.high %v464_v33, %v464_v33  ;;  %v656_v35 = vcombine.low %v464_v33, %v464_v33 }
 0x139   : > { %658 = vmatprep.subr.msk.bf16.mxu0 %vm500_vm1, %v657_v34  ;;  %v502_v36 = vsel %vm500_vm1, %v656_v35, 0 }
 0x13a   : > { %512 = vmatpush1.bf16.msra.mxu0 %v502_v36 }
 0x13b   : > { %v469_v38 = vpop.permute.xlu1 %468 }
 0x13d   : > { %659 = vmatmul.mubr.msk.bf16.vlgmr.msra.gmra.mrb[0].mxu0 %vm496_vm2, %v459_v37 }
 0x210   : > { %v541_v39 = vpop.f32.mrb[0].mxu0 }
 0x211   : > { %v542_v40 = vadd.f32 %v541_v39, %v469_v38  ;;  %v543_v41 = vpop.f32.mrb[1].mxu0 }
 0x212   : > { %v544_v42 = vadd.f32 %v543_v41, %v469_v38  ;;  %v545_v43 = vpop.f32.mrb[2].mxu0 }
 0x213   : > { %548 = vst [vmem:[%s188_s30] sm:$0xff] %v542_v40  ;;  %v546_v44 = vpop.f32.mrb[3].mxu0 }
 0x214   : > { %549 = vst [vmem:[%s188_s30 + $0x8] sm:$0xff] %v544_v42 }
 0x215   : > { %764 = shalt.err (!%p761_p5)
}
 0x216   : > { %s765_s18 = scalar_lea.hbm %s944_s7, 256  ;;  %s769_s23 = scalar_lea.hbm %s994_s3, 512 }
 0x217   : > { %p766_p6 = scmp.ne.s32.totalorder %s944_s7, %s765_s18  ;;  %p770_p10 = scmp.lt.u32.totalorder %s944_s7, %s994_s3 }
 0x218   : > { %p771_p11 = scmp.lt.u32.totalorder %s769_s23, %s765_s18  ;;  %p773_p13 = scmp.lt.u32.totalorder %s765_s18, %s944_s7 }
 0x219   : > { %p767_p7 = pnand %p766_p6, %p903_p4 }
 0x21a   : > { %p772_p12 = por %p771_p11, %p770_p10 }
 0x21b   : > { %p768_p9 = pneg %p767_p7 }
 0x21c   : > { %p774_p0 = por %p773_p13, %p772_p12 }
 0x21e   : > { %p775_p1 = pnand %p774_p0, %p768_p9 }
 0x220   : > { %778 = shalt.err (!%p775_p1)
}
 0x221   : > { %667 = dma.vmem_to_hbm [thread:$0]  (%p903_p4), %s946_s4, 256, %s944_s7, %s551_s15  }
 0x222 PF: > { %p673_p2 = scmp.ge.s32.totalorder %s829_s17, 2  ;;  %s579_s28 = sand.u32 1, %s809_s12  }
 0x223   : > { %s580_s29 = scalar_lea.sflag [#allocation5], %s579_s28 }
 0x224   : > { %p670_p3 = pnand %p673_p2, %p910_p8 }
 0x226   : > { %804 = dma.done.wait (!%p670_p3), %s580_s29, 256  }
 0x227   : > { %806 = vsyncadd (!%p670_p3), %s580_s29, 4294967040  ;;  %s16_s17 = sadd.s32 1, %s829_s17   ;;  %s997_s12 = smov %s813_s13 }
 0x228   : > { %p13_p5 = scmp.ge.s32.totalorder %s16_s17, 4   ;;  %s998_s13 = smov %s817_s14 }
 0x229   : > { %s999_s14 = smov %s916_s25  ;;  %s1000_s15 = smov %s825_s16 }
 0x22a   : > { %s1001_s16 = smov %s1003_s20  ;;  %15 = sbr.rel (!%p13_p5) target bundleno = 4 (0x4), region = 71 }
 0x231   :  { %585 = vsyncpa [#allocation5], 1 }
 0x232   :  { %587 = vsyncpa [#allocation5 + $0x1], 1 }

</bundles_post_ra>
